<compile_context>
chip_gen: v6e
topology: v6e:2x2x1
jax: 0.10.0
libtpu: 0.0.40
codegen_flags: <defaults>
</compile_context>

<pallas_src>
import functools

import jax
import jax.numpy as jnp
from jax.experimental import pallas as pl
from jax.experimental.pallas import tpu as pltpu


def slcd_kernel(x_ref, w1_ref, b1_ref, w2_ref, b2_ref, o_ref):
    # x_ref: (F, TILE_B) -- features on sublanes, batch on the 128-lane axis.
    x = x_ref[...].astype(jnp.float32)
    w1 = w1_ref[...].astype(jnp.float32)   # (F, F), PyTorch (out, in) layout
    w2 = w2_ref[...].astype(jnp.float32)
    b1 = b1_ref[...].astype(jnp.float32)   # (F, 1)
    b2 = b2_ref[...].astype(jnp.float32)

    # fc1 + ReLU.  W @ x consumes the PyTorch (out, in) weights directly and
    # runs on the MXU (idle vex slot); bias add is a cheap lane broadcast.
    h = jnp.maximum(jnp.dot(w1, x, preferred_element_type=jnp.float32) + b1, 0.0)
    # fc2
    y = jnp.dot(w2, h, preferred_element_type=jnp.float32) + b2

    # Softmax over the feature axis (axis 0 in this transposed layout).
    m = jnp.max(y, axis=0, keepdims=True)            # (1, TILE_B)  XLU reduce
    e = jnp.exp(y - m)                               # EUP
    s = jnp.sum(e, axis=0, keepdims=True)            # (1, TILE_B)
    inv = 1.0 / s                                    # exact: rows sum to 1
    o_ref[...] = (e * inv).astype(o_ref.dtype)


@functools.partial(jax.jit, static_argnames=("tile_b",))
def slcd_forward(x, w1, b1, w2, b2, tile_b=131072):
    """x: (B, 6) float32.  w1, w2: (6, 6) PyTorch (out, in).  b1, b2: (6,)."""
    B, F = x.shape

    # Lane-aligned batch tiling.  Large tiles amortize the ~0.35 us per-step
    # pipeline overhead; the cap below keeps >= 2 grid steps (when the batch is
    # big enough) so the "parallel" axis can shard across v7x's two TCs.
    lanes = ((B + 127) // 128) * 128
    if lanes >= 256:
        tile_b = min(tile_b, ((lanes // 2 + 127) // 128) * 128)
    tile_b = max(128, min(tile_b, lanes))
    n_tiles = pl.cdiv(lanes, tile_b)
    b_pad = n_tiles * tile_b

    # Transposed, lane-dense activations: (F, b_pad), batch on the lane axis.
    # (allow_input_fusion lets XLA fuse this producer into the input DMA.)
    xT = jnp.pad(x.T, ((0, 0), (0, b_pad - B)))
    b1c = jnp.reshape(b1, (F, 1))
    b2c = jnp.reshape(b2, (F, 1))

    const = lambda shape: pl.BlockSpec(shape, lambda i: (0, 0))

    out_t = pl.pallas_call(
        slcd_kernel,
        out_shape=jax.ShapeDtypeStruct((F, b_pad), x.dtype),
        grid=(n_tiles,),
        in_specs=[
            pl.BlockSpec((F, tile_b), lambda i: (0, i)),   # activations: tiled over batch
            const((F, F)),                                 # w1 (tiny, VMEM-resident)
            const((F, 1)),                                 # b1
            const((F, F)),                                 # w2
            const((F, 1)),                                 # b2
        ],
        out_specs=pl.BlockSpec((F, tile_b), lambda i: (0, i)),
        compiler_params=pltpu.CompilerParams(
            dimension_semantics=("parallel",),             # megacore / v7x 2-TC sharding
            vmem_limit_bytes=64 << 20,                     # big tiles on v5e's 16 MiB default
            allow_input_fusion=[True, False, False, False, False],
        ),
    )(xT, w1, b1c, w2, b2c)

    # Back to the PyTorch-facing (B, F) layout; drop the lane padding.
    # TODO(synk): if the surrounding model can consume (F, B), return out_t
    # directly and skip this extra HBM round trip.
    return out_t[:, :B].T


if __name__ == "__main__":
    key = jax.random.PRNGKey(0)
    k_x, k_w1, k_b1, k_w2, k_b2 = jax.random.split(key, 5)

    B, F = 8, 6  # batch=8, in/out features=6 per the module definition
    x = jax.random.normal(k_x, (B, F), dtype=jnp.float32)

    # PyTorch-style uniform(-1/sqrt(in), 1/sqrt(in)) init.
    bound = 1.0 / (6.0 ** 0.5)
    w1 = jax.random.uniform(k_w1, (F, F), jnp.float32, -bound, bound)
    b1 = jax.random.uniform(k_b1, (F,), jnp.float32, -bound, bound)
    w2 = jax.random.uniform(k_w2, (F, F), jnp.float32, -bound, bound)
    b2 = jax.random.uniform(k_b2, (F,), jnp.float32, -bound, bound)

    out = jax.block_until_ready(slcd_forward(x, w1, b1, w2, b2))

    # Pure-JAX reference.
    ref = jax.nn.softmax(jnp.maximum(x @ w1.T + b1, 0.0) @ w2.T + b2, axis=1)
    assert out.shape == (B, F)
    assert jnp.allclose(out, ref, atol=5e-3, rtol=5e-3), "mismatch vs reference"
    assert jnp.allclose(jnp.sum(out, axis=1), 1.0, atol=1e-3), "softmax rows must sum to 1"

    print("KERNEL_OK")
</pallas_src>

<mosaic_0001>
module attributes {stable_mosaic.version = 11 : i64} {
  func.func @slcd_kernel(%arg0: i32, %arg1: memref<6x128xf32, #tpu.memory_space<vmem>>, %arg2: memref<6x6xf32, #tpu.memory_space<vmem>>, %arg3: memref<6x1xf32, #tpu.memory_space<vmem>>, %arg4: memref<6x6xf32, #tpu.memory_space<vmem>>, %arg5: memref<6x1xf32, #tpu.memory_space<vmem>>, %arg6: memref<6x128xf32, #tpu.memory_space<vmem>>) attributes {dimension_semantics = [#tpu.dimension_semantics<parallel>], iteration_bounds = array<i64: 1>, scalar_prefetch = 0 : i64, scratch_operands = 0 : i64, tpu.core_type = #tpu.core_type<tc>, window_params = [{transform_indices = @transform_0, window_bounds = array<i64: 6, 128>}, {pipeline_mode = #tpu.pipeline_mode<synchronous>, transform_indices = @transform_1, window_bounds = array<i64: 6, 6>}, {pipeline_mode = #tpu.pipeline_mode<synchronous>, transform_indices = @transform_2, window_bounds = array<i64: 6, 1>}, {pipeline_mode = #tpu.pipeline_mode<synchronous>, transform_indices = @transform_3, window_bounds = array<i64: 6, 6>}, {pipeline_mode = #tpu.pipeline_mode<synchronous>, transform_indices = @transform_4, window_bounds = array<i64: 6, 1>}, {transform_indices = @transform_5, window_bounds = array<i64: 6, 128>}]} {
    %c0 = arith.constant 0 : index
    %c0_0 = arith.constant 0 : index
    %0 = vector.load %arg1[%c0, %c0_0] : memref<6x128xf32, #tpu.memory_space<vmem>>, vector<6x128xf32>
    %c0_1 = arith.constant 0 : index
    %c0_2 = arith.constant 0 : index
    %1 = vector.load %arg2[%c0_1, %c0_2] : memref<6x6xf32, #tpu.memory_space<vmem>>, vector<6x6xf32>
    %c0_3 = arith.constant 0 : index
    %c0_4 = arith.constant 0 : index
    %2 = vector.load %arg4[%c0_3, %c0_4] : memref<6x6xf32, #tpu.memory_space<vmem>>, vector<6x6xf32>
    %c0_5 = arith.constant 0 : index
    %c0_6 = arith.constant 0 : index
    %3 = vector.load %arg3[%c0_5, %c0_6] : memref<6x1xf32, #tpu.memory_space<vmem>>, vector<6x1xf32>
    %c0_7 = arith.constant 0 : index
    %c0_8 = arith.constant 0 : index
    %4 = vector.load %arg5[%c0_7, %c0_8] : memref<6x1xf32, #tpu.memory_space<vmem>>, vector<6x1xf32>
    %cst = arith.constant dense<0.000000e+00> : vector<6x128xf32>
    %5 = tpu.matmul %1, %0, %cst {dimension_numbers = #tpu.dot_dimension_numbers<[1], [0], [0], [1], [0, 0, 1, 1], [], []>} : vector<6x6xf32>, vector<6x128xf32>, vector<6x128xf32> -> vector<6x128xf32>
    %6 = vector.broadcast %3 : vector<6x1xf32> to vector<6x128xf32>
    %7 = arith.addf %5, %6 : vector<6x128xf32>
    %cst_9 = arith.constant 0.000000e+00 : f32
    %8 = vector.broadcast %cst_9 : f32 to vector<6x128xf32>
    %9 = arith.maximumf %7, %8 : vector<6x128xf32>
    %cst_10 = arith.constant dense<0.000000e+00> : vector<6x128xf32>
    %10 = tpu.matmul %2, %9, %cst_10 {dimension_numbers = #tpu.dot_dimension_numbers<[1], [0], [0], [1], [0, 0, 1, 1], [], []>} : vector<6x6xf32>, vector<6x128xf32>, vector<6x128xf32> -> vector<6x128xf32>
    %11 = vector.broadcast %4 : vector<6x1xf32> to vector<6x128xf32>
    %12 = arith.addf %10, %11 : vector<6x128xf32>
    %cst_11 = arith.constant dense<0xFF800000> : vector<128xf32>
    %13 = vector.multi_reduction <maximumf>, %12, %cst_11 [0] : vector<6x128xf32> to vector<128xf32>
    %14 = vector.shape_cast %13 : vector<128xf32> to vector<1x128xf32>
    %15 = vector.broadcast %14 : vector<1x128xf32> to vector<6x128xf32>
    %16 = arith.subf %12, %15 : vector<6x128xf32>
    %17 = math.exp %16 : vector<6x128xf32>
    %cst_12 = arith.constant dense<0.000000e+00> : vector<128xf32>
    %18 = vector.multi_reduction <add>, %17, %cst_12 [0] : vector<6x128xf32> to vector<128xf32>
    %19 = vector.shape_cast %18 : vector<128xf32> to vector<1x128xf32>
    %cst_13 = arith.constant 1.000000e+00 : f32
    %20 = vector.broadcast %cst_13 : f32 to vector<1x128xf32>
    %21 = arith.divf %20, %19 : vector<1x128xf32>
    %22 = vector.broadcast %21 : vector<1x128xf32> to vector<6x128xf32>
    %23 = arith.mulf %17, %22 : vector<6x128xf32>
    %c0_14 = arith.constant 0 : index
    %c0_15 = arith.constant 0 : index
    %24 = vector.load %arg6[%c0_14, %c0_15] : memref<6x128xf32, #tpu.memory_space<vmem>>, vector<6x128xf32>
    tpu.vector_store %arg6[%c0_14, %c0_15], %23 {strides = array<i32>} : memref<6x128xf32, #tpu.memory_space<vmem>>, vector<6x128xf32>,
    return
  }
  func.func @transform_0(%arg0: i32) -> (i32, i32) {
    %c0_i32 = arith.constant 0 : i32
    %c0_i32_0 = arith.constant 0 : i32
    return %c0_i32, %arg0 : i32, i32
  }
  func.func @transform_1(%arg0: i32) -> (i32, i32) {
    %c0_i32 = arith.constant 0 : i32
    %c0_i32_0 = arith.constant 0 : i32
    %c0_i32_1 = arith.constant 0 : i32
    return %c0_i32, %c0_i32_0 : i32, i32
  }
  func.func @transform_2(%arg0: i32) -> (i32, i32) {
    %c0_i32 = arith.constant 0 : i32
    %c0_i32_0 = arith.constant 0 : i32
    %c0_i32_1 = arith.constant 0 : i32
    return %c0_i32, %c0_i32_0 : i32, i32
  }
  func.func @transform_3(%arg0: i32) -> (i32, i32) {
    %c0_i32 = arith.constant 0 : i32
    %c0_i32_0 = arith.constant 0 : i32
    %c0_i32_1 = arith.constant 0 : i32
    return %c0_i32, %c0_i32_0 : i32, i32
  }
  func.func @transform_4(%arg0: i32) -> (i32, i32) {
    %c0_i32 = arith.constant 0 : i32
    %c0_i32_0 = arith.constant 0 : i32
    %c0_i32_1 = arith.constant 0 : i32
    return %c0_i32, %c0_i32_0 : i32, i32
  }
  func.func @transform_5(%arg0: i32) -> (i32, i32) {
    %c0_i32 = arith.constant 0 : i32
    %c0_i32_0 = arith.constant 0 : i32
    return %c0_i32, %arg0 : i32, i32
  }
}

</mosaic_0001>

<bundles_post_ra>
// kernel: slcd_forward.2
= control target key start
LH: loop header
LB: loop body
LE: loop exit
PB: predicated region body
PF: predicated region fallthrough
CT: control target
= control target key end

     0   :  { %s320_s0 = inlined_call_operand.vmem [shape: f32[6,6], index: 0, kind: input, shape index: {}]   ;;  %s321_s1 = inlined_call_operand.vmem [shape: f32[6,1], index: 1, kind: input, shape index: {}]   ;;  %s322_s2 = inlined_call_operand.vmem [shape: f32[6,6], index: 2, kind: input, shape index: {}]   ;;  %s323_s3 = inlined_call_operand.vmem [shape: f32[6,1], index: 3, kind: input, shape index: {}]   ;;  %s324_s4 = inlined_call_operand.vmem [shape: f32[6,8], index: 4, kind: input, shape index: {}]   ;;  %s325_s5 = inlined_call_operand.<no memory space> [shape: f32[], index: 5, kind: input, shape index: {}]   ;;  %s326_s6 = inlined_call_operand.vmem [shape: f32[6,128], index: 6, kind: output, shape index: {}]  }
   0x1   :  { %v11_v0 = vstv %s325_s5 }
   0x2   :  { %v23_v1 = vlaneseq  ;;  %v257_v2 = vmov 0.0   ;;  %vm258_vm0 = vmmov 0   ;;  %v39_v3 = vld [vmem:[%s321_s1] sm:$0x3f]  ;;  %v259_v7 = vmov 0  }
   0x3   :  { %239 = vmatprep.subr.mxu0 %v257_v2  ;;  %241 = vmatprep.mubr.msk.f32.mxu0 %vm258_vm0, %v257_v2  ;;  %v22_v4 = vld [vmem:[%s324_s4] sm:$0x3f]  ;;  %vm50_vm3 = vcmask 1045504   ;;  %vm46_vm4 = vcmask 48128  }
   0x4   :  { %v24_v5 = vshrl.u32 %v23_v1, 7  ;;  %v29_v6 = vand.u32 127, %v23_v1  ;;  %252 = vset.pattern.permute.xlu0 %v259_v7  ;;  %244 = vmatprep.subr.mxu1 %v257_v2  ;;  %v40_v8 = vld [vmem:[%s323_s3] sm:$0x3f] }
   0x5   :  { %43 = vperm.xlu0 %252, %v39_v3   ;;  %246 = vmatprep.mubr.msk.f32.mxu1 %vm258_vm0, %v257_v2  ;;  %v37_v11 = vld [vmem:[%s320_s0] sm:$0x3f] }
   0x6   :  { %vm26_vm1 = vcmp.lt.s32.totalorder %v24_v5, 6  ;;  %vm31_vm2 = vcmp.lt.s32.totalorder %v29_v6, 8  ;;  %v38_v18 = vld [vmem:[%s322_s2] sm:$0x3f] }
   0x7   :  { %v27_v9 = vsel %vm26_vm1, %v22_v4, %v11_v0 }
   0x8   :  { %v32_v10 = vsel %vm31_vm2, %v27_v9, %v11_v0 }
   0x9   :  { %35 = vst [vmem:[#allocation7] sm:$0xff] %v32_v10  ;;  %127 = vperm.xlu0 %252, %v40_v8  }
  0x10   :  { %v36_v12 = vld [vmem:[#allocation7] sm:$0x3f] }
  0x11   :  { %240 = vmatpush3.msk.msra.mxu0 %vm50_vm3, %v36_v12 }
  0x12   :  { %242 = vmatmul.mubr.msk.f32.vlgmr.msra.gmra.mxu0 %vm46_vm4, %v37_v11 }
  0x80   :  { %v44_v13 = vpop.permute.xlu0 %43 }
  0x84   :  { %v128_v19 = vpop.permute.xlu0 %127 }
  0xd2   :  { %v120_v14 = vpop.f32.mrf.mxu0 }
  0xd3   :  { %v121_v15 = vadd.f32 %v120_v14, %v44_v13 }
  0xd4   :  { %v243_v16 = vpop.f32.mrf.mxu0 }
  0xd5   :  { %v124_v17 = vmax.f32 %v121_v15, 0.0 }
  0xd7   :  { %245 = vmatpush3.msk.msra.mxu1 %vm50_vm3, %v124_v17 }
  0xd8   :  { %247 = vmatmul.mubr.msk.f32.vlgmr.msra.gmra.mxu1 %vm46_vm4, %v38_v18 }
 0x198   :  { %v202_v20 = vpop.f32.mrf.mxu1 }
 0x199   :  { %v203_v21 = vadd.f32 %v202_v20, %v128_v19 }
 0x19a   :  { %v248_v22 = vpop.f32.mrf.mxu1 }
 0x19b   :  { %v206_v23 = vsel %vm50_vm3, %v203_v21, -inf }
 0x19c   :  { %v207_v24 = vrot.slane %v206_v23, 4 }
 0x19e   :  { %v208_v25 = vmax.f32 %v206_v23, %v207_v24 }
 0x1a0   :  { %v209_v26 = vrot.slane %v208_v25, 2 }
 0x1a2   :  { %v210_v27 = vmax.f32 %v208_v25, %v209_v26 }
 0x1a4   :  { %v211_v28 = vrot.slane %v210_v27, 1 }
 0x1a6   :  { %v212_v29 = vmax.f32 %v210_v27, %v211_v28 }
 0x1a8   :  { %v213_v30 = vsub.f32 %v203_v21, %v212_v29 }
 0x1aa   :  { %v214_v31 = vmul.f32 1.442695, %v213_v30 }
 0x1ac   :  { %253 = vpow2.f32 %v214_v31 }
 0x1b9   :  { %v254_v32 = vpop.eup %253 }
 0x1ba   :  { %v216_v33 = vsel %vm50_vm3, %v254_v32, 0.0 }
 0x1bb   :  { %v217_v34 = vrot.slane %v216_v33, 4 }
 0x1bd   :  { %v218_v35 = vadd.f32 %v217_v34, %v216_v33 }
 0x1bf   :  { %v219_v36 = vrot.slane %v218_v35, 2 }
 0x1c1   :  { %v220_v37 = vadd.f32 %v219_v36, %v218_v35 }
 0x1c3   :  { %v221_v38 = vrot.slane %v220_v37, 1 }
 0x1c5   :  { %v222_v39 = vadd.f32 %v221_v38, %v220_v37 }
 0x1c7   :  { %255 = vrcp.f32 %v222_v39 }
 0x1d4   :  { %v256_v40 = vpop.eup %255 }
 0x1d5   :  { %v225_v41 = vmul.f32 %v256_v40, %v254_v32 }
 0x1d7   :  { %226 = vst [vmem:[%s326_s6] sm:$0x3f] %v225_v41 }

</bundles_post_ra>
